<compile_context>
chip_gen: v6e
topology: v6e:2x2x1
jax: 0.10.0
libtpu: 0.0.40
codegen_flags: <defaults>
</compile_context>

<pallas_src>
import math

import jax
import jax.numpy as jnp
from jax.experimental import pallas as pl
from jax.experimental.pallas import tpu as pltpu

DIM_FEATURE = 64
H1, H2, H3 = 1000, 200, 1
H1P, H2P = 1024, 256          # lane-dense (multiple-of-128) padded hidden dims


def _mlp_kernel(x_ref, w1_ref, b1_ref, w2_ref, b2_ref, w3_ref, b3_ref, o_ref):
    # x tile: (TB, 64) f32 -> bf16 for the MXU; accumulate in f32.
    x = x_ref[...].astype(jnp.bfloat16)

    # Layer 1: (TB, 64) @ (64, 1024) -> (TB, 1024), f32 accumulation.
    h1 = jnp.dot(x, w1_ref[...], preferred_element_type=jnp.float32)
    h1 = h1 + b1_ref[...]                          # (TB, 1024) + (1, 1024)
    h1 = jnp.where(h1 > 0, h1, 0.2 * h1)           # LeakyReLU(0.2), f32 VPU

    # Layer 2: (TB, 1024) @ (1024, 256) -> (TB, 256), f32 accumulation.
    h2 = jnp.dot(h1.astype(jnp.bfloat16), w2_ref[...],
                 preferred_element_type=jnp.float32)
    h2 = h2 + b2_ref[...]                          # (TB, 256) + (1, 256)
    h2 = jnp.where(h2 > 0, h2, 0.2 * h2)

    # Layer 3 (200->1): VPU multiply + lane reduce instead of an N=1 MXU op.
    h3 = jnp.sum(h2 * w3_ref[...], axis=-1, keepdims=True)   # (TB, 1)
    h3 = h3 + b3_ref[...]                          # (TB, 1) + (1, 1)

    o_ref[...] = jax.nn.sigmoid(h3).astype(o_ref.dtype)       # EUP path


def distribution_discriminator(x, w1, b1, w2, b2, w3, b3, *, tb=256):
    """x: (B, 64) f32 -> (B, 1) f32 in (0, 1).

    Weights are stored (in_features, out_features), so x @ W + b matches
    PyTorch's x @ W.T + b with W of shape (out_features, in_features).
    """
    B, F = x.shape
    assert F == DIM_FEATURE

    # Batch tile: multiple of 8 (f32 sublanes), no larger than the padded batch.
    tb = max(8, min(((tb + 7) // 8) * 8, ((B + 7) // 8) * 8))
    Bp = pl.cdiv(B, tb) * tb
    xp = x if Bp == B else jnp.pad(x, ((0, Bp - B), (0, 0)))

    # Zero-pad to lane-dense hidden dims; bf16 weights for the big matmuls.
    w1p = jnp.pad(w1, ((0, 0), (0, H1P - H1))).astype(jnp.bfloat16)         # (64, 1024)
    b1p = jnp.pad(b1, ((0, 0), (0, H1P - H1)))                              # (1, 1024) f32
    w2p = jnp.pad(w2, ((0, H1P - H1), (0, H2P - H2))).astype(jnp.bfloat16)  # (1024, 256)
    b2p = jnp.pad(b2, ((0, 0), (0, H2P - H2)))                              # (1, 256) f32
    w3p = jnp.pad(w3.reshape(1, H2), ((0, 0), (0, H2P - H2)))               # (1, 256) f32
    b3p = b3                                                                # (1, 1) f32

    resident = lambda shape: pl.BlockSpec(shape, lambda i: (0, 0))

    out = pl.pallas_call(
        _mlp_kernel,
        out_shape=jax.ShapeDtypeStruct((Bp, H3), jnp.float32),
        grid_spec=pltpu.PrefetchScalarGridSpec(
            num_scalar_prefetch=0,
            grid=(Bp // tb,),
            in_specs=[
                pl.BlockSpec((tb, DIM_FEATURE), lambda i: (i, 0)),  # x tile moves
                resident((DIM_FEATURE, H1P)),                       # w1
                resident((1, H1P)),                                 # b1
                resident((H1P, H2P)),                               # w2
                resident((1, H2P)),                                 # b2
                resident((1, H2P)),                                 # w3 (row vector)
                resident((1, 1)),                                   # b3
            ],
            out_specs=pl.BlockSpec((tb, H3), lambda i: (i, 0)),
        ),
        compiler_params=pltpu.CompilerParams(
            dimension_semantics=("parallel",),
            vmem_limit_bytes=16 << 20,
        ),
    )(xp, w1p, b1p, w2p, b2p, w3p, b3p)

    return out[:B]


def init_params(key):
    """Deterministic init mimicking PyTorch nn.Linear default:
    U(-1/sqrt(fan_in), 1/sqrt(fan_in)) for weight and bias."""
    ks = jax.random.split(key, 6)

    def linear(kw, kb, fan_in, fan_out):
        bound = 1.0 / math.sqrt(fan_in)
        w = jax.random.uniform(kw, (fan_in, fan_out), jnp.float32, -bound, bound)
        b = jax.random.uniform(kb, (1, fan_out), jnp.float32, -bound, bound)
        return w, b

    w1, b1 = linear(ks[0], ks[1], DIM_FEATURE, H1)
    w2, b2 = linear(ks[2], ks[3], H1, H2)
    w3, b3 = linear(ks[4], ks[5], H2, H3)
    return w1, b1, w2, b2, w3, b3


def reference(x, w1, b1, w2, b2, w3, b3):
    h = x @ w1 + b1
    h = jnp.where(h > 0, h, 0.2 * h)
    h = h @ w2 + b2
    h = jnp.where(h > 0, h, 0.2 * h)
    h = h @ w3 + b3
    return jax.nn.sigmoid(h)


if __name__ == "__main__":
    key = jax.random.PRNGKey(0)
    k_x, k_p = jax.random.split(key)

    batch = 8
    x = jax.random.normal(k_x, (batch, DIM_FEATURE), jnp.float32)
    params = init_params(k_p)

    out = distribution_discriminator(x, *params)
    out = jax.block_until_ready(out)

    ref = reference(x, *params)
    assert out.shape == (batch, 1), out.shape
    # bf16 matmul inputs with f32 accumulation -> loosened tolerance vs f32 ref.
    assert jnp.allclose(out, ref, atol=1e-2, rtol=1e-2), (
        f"max abs diff {jnp.max(jnp.abs(out - ref))}"
    )
    print("KERNEL_OK")
</pallas_src>

<mosaic_0001>
module attributes {stable_mosaic.version = 11 : i64} {
  func.func @_mlp_kernel(%arg0: i32, %arg1: memref<8x64xf32, #tpu.memory_space<vmem>>, %arg2: memref<64x1024xbf16, #tpu.memory_space<vmem>>, %arg3: memref<1x1024xf32, #tpu.memory_space<vmem>>, %arg4: memref<1024x256xbf16, #tpu.memory_space<vmem>>, %arg5: memref<1x256xf32, #tpu.memory_space<vmem>>, %arg6: memref<1x256xf32, #tpu.memory_space<vmem>>, %arg7: memref<1x1xf32, #tpu.memory_space<vmem>>, %arg8: memref<8x1xf32, #tpu.memory_space<vmem>>) attributes {dimension_semantics = [#tpu.dimension_semantics<parallel>], iteration_bounds = array<i64: 1>, scalar_prefetch = 0 : i64, scratch_operands = 0 : i64, tpu.core_type = #tpu.core_type<tc>, window_params = [{transform_indices = @transform_0, window_bounds = array<i64: 8, 64>}, {pipeline_mode = #tpu.pipeline_mode<synchronous>, transform_indices = @transform_1, window_bounds = array<i64: 64, 1024>}, {pipeline_mode = #tpu.pipeline_mode<synchronous>, transform_indices = @transform_2, window_bounds = array<i64: 1, 1024>}, {pipeline_mode = #tpu.pipeline_mode<synchronous>, transform_indices = @transform_3, window_bounds = array<i64: 1024, 256>}, {pipeline_mode = #tpu.pipeline_mode<synchronous>, transform_indices = @transform_4, window_bounds = array<i64: 1, 256>}, {pipeline_mode = #tpu.pipeline_mode<synchronous>, transform_indices = @transform_5, window_bounds = array<i64: 1, 256>}, {pipeline_mode = #tpu.pipeline_mode<synchronous>, transform_indices = @transform_6, window_bounds = array<i64: 1, 1>}, {transform_indices = @transform_7, window_bounds = array<i64: 8, 1>}]} {
    %c0 = arith.constant 0 : index
    %c0_0 = arith.constant 0 : index
    %0 = vector.load %arg1[%c0, %c0_0] : memref<8x64xf32, #tpu.memory_space<vmem>>, vector<8x64xf32>
    %1 = arith.truncf %0 : vector<8x64xf32> to vector<8x64xbf16>
    %c0_1 = arith.constant 0 : index
    %c0_2 = arith.constant 0 : index
    %2 = vector.load %arg2[%c0_1, %c0_2] : memref<64x1024xbf16, #tpu.memory_space<vmem>>, vector<64x1024xbf16>
    %cst = arith.constant dense<0.000000e+00> : vector<8x1024xf32>
    %3 = tpu.matmul %1, %2, %cst {dimension_numbers = #tpu.dot_dimension_numbers<[1], [0], [0], [1], [0, 0, 1, 1], [], []>} : vector<8x64xbf16>, vector<64x1024xbf16>, vector<8x1024xf32> -> vector<8x1024xf32>
    %c0_3 = arith.constant 0 : index
    %c0_4 = arith.constant 0 : index
    %4 = vector.load %arg3[%c0_3, %c0_4] : memref<1x1024xf32, #tpu.memory_space<vmem>>, vector<1x1024xf32>
    %5 = vector.broadcast %4 : vector<1x1024xf32> to vector<8x1024xf32>
    %6 = arith.addf %3, %5 : vector<8x1024xf32>
    %cst_5 = arith.constant 0.000000e+00 : f32
    %7 = vector.broadcast %cst_5 : f32 to vector<8x1024xf32>
    %8 = arith.cmpf ogt, %6, %7 : vector<8x1024xf32>
    %cst_6 = arith.constant 2.000000e-01 : f32
    %9 = vector.broadcast %cst_6 : f32 to vector<8x1024xf32>
    %10 = arith.mulf %9, %6 : vector<8x1024xf32>
    %11 = arith.select %8, %6, %10 : vector<8x1024xi1>, vector<8x1024xf32>
    %12 = arith.truncf %11 : vector<8x1024xf32> to vector<8x1024xbf16>
    %c0_7 = arith.constant 0 : index
    %c0_8 = arith.constant 0 : index
    %13 = vector.load %arg4[%c0_7, %c0_8] : memref<1024x256xbf16, #tpu.memory_space<vmem>>, vector<1024x256xbf16>
    %cst_9 = arith.constant dense<0.000000e+00> : vector<8x256xf32>
    %14 = tpu.matmul %12, %13, %cst_9 {dimension_numbers = #tpu.dot_dimension_numbers<[1], [0], [0], [1], [0, 0, 1, 1], [], []>} : vector<8x1024xbf16>, vector<1024x256xbf16>, vector<8x256xf32> -> vector<8x256xf32>
    %c0_10 = arith.constant 0 : index
    %c0_11 = arith.constant 0 : index
    %15 = vector.load %arg5[%c0_10, %c0_11] : memref<1x256xf32, #tpu.memory_space<vmem>>, vector<1x256xf32>
    %16 = vector.broadcast %15 : vector<1x256xf32> to vector<8x256xf32>
    %17 = arith.addf %14, %16 : vector<8x256xf32>
    %cst_12 = arith.constant 0.000000e+00 : f32
    %18 = vector.broadcast %cst_12 : f32 to vector<8x256xf32>
    %19 = arith.cmpf ogt, %17, %18 : vector<8x256xf32>
    %cst_13 = arith.constant 2.000000e-01 : f32
    %20 = vector.broadcast %cst_13 : f32 to vector<8x256xf32>
    %21 = arith.mulf %20, %17 : vector<8x256xf32>
    %22 = arith.select %19, %17, %21 : vector<8x256xi1>, vector<8x256xf32>
    %c0_14 = arith.constant 0 : index
    %c0_15 = arith.constant 0 : index
    %23 = vector.load %arg6[%c0_14, %c0_15] : memref<1x256xf32, #tpu.memory_space<vmem>>, vector<1x256xf32>
    %24 = vector.broadcast %23 : vector<1x256xf32> to vector<8x256xf32>
    %25 = arith.mulf %22, %24 : vector<8x256xf32>
    %cst_16 = arith.constant dense<0.000000e+00> : vector<8xf32>
    %26 = vector.multi_reduction <add>, %25, %cst_16 [1] : vector<8x256xf32> to vector<8xf32>
    %27 = vector.shape_cast %26 : vector<8xf32> to vector<8x1xf32>
    %c0_17 = arith.constant 0 : index
    %c0_18 = arith.constant 0 : index
    %28 = vector.load %arg7[%c0_17, %c0_18] : memref<1x1xf32, #tpu.memory_space<vmem>>, vector<1x1xf32>
    %29 = vector.broadcast %28 : vector<1x1xf32> to vector<8x1xf32>
    %30 = arith.addf %27, %29 : vector<8x1xf32>
    %31 = arith.negf %30 : vector<8x1xf32>
    %32 = math.exp %31 : vector<8x1xf32>
    %cst_19 = arith.constant 1.000000e+00 : f32
    %33 = vector.broadcast %cst_19 : f32 to vector<8x1xf32>
    %34 = arith.addf %33, %32 : vector<8x1xf32>
    %35 = arith.divf %33, %34 : vector<8x1xf32>
    %c0_20 = arith.constant 0 : index
    %c0_21 = arith.constant 0 : index
    %36 = vector.load %arg8[%c0_20, %c0_21] : memref<8x1xf32, #tpu.memory_space<vmem>>, vector<8x1xf32>
    tpu.vector_store %arg8[%c0_20, %c0_21], %35 {strides = array<i32>} : memref<8x1xf32, #tpu.memory_space<vmem>>, vector<8x1xf32>,
    return
  }
  func.func @transform_0(%arg0: i32) -> (i32, i32) {
    %c0_i32 = arith.constant 0 : i32
    %c0_i32_0 = arith.constant 0 : i32
    return %arg0, %c0_i32 : i32, i32
  }
  func.func @transform_1(%arg0: i32) -> (i32, i32) {
    %c0_i32 = arith.constant 0 : i32
    %c0_i32_0 = arith.constant 0 : i32
    %c0_i32_1 = arith.constant 0 : i32
    return %c0_i32, %c0_i32_0 : i32, i32
  }
  func.func @transform_2(%arg0: i32) -> (i32, i32) {
    %c0_i32 = arith.constant 0 : i32
    %c0_i32_0 = arith.constant 0 : i32
    %c0_i32_1 = arith.constant 0 : i32
    return %c0_i32, %c0_i32_0 : i32, i32
  }
  func.func @transform_3(%arg0: i32) -> (i32, i32) {
    %c0_i32 = arith.constant 0 : i32
    %c0_i32_0 = arith.constant 0 : i32
    %c0_i32_1 = arith.constant 0 : i32
    return %c0_i32, %c0_i32_0 : i32, i32
  }
  func.func @transform_4(%arg0: i32) -> (i32, i32) {
    %c0_i32 = arith.constant 0 : i32
    %c0_i32_0 = arith.constant 0 : i32
    %c0_i32_1 = arith.constant 0 : i32
    return %c0_i32, %c0_i32_0 : i32, i32
  }
  func.func @transform_5(%arg0: i32) -> (i32, i32) {
    %c0_i32 = arith.constant 0 : i32
    %c0_i32_0 = arith.constant 0 : i32
    %c0_i32_1 = arith.constant 0 : i32
    return %c0_i32, %c0_i32_0 : i32, i32
  }
  func.func @transform_6(%arg0: i32) -> (i32, i32) {
    %c0_i32 = arith.constant 0 : i32
    %c0_i32_0 = arith.constant 0 : i32
    %c0_i32_1 = arith.constant 0 : i32
    return %c0_i32, %c0_i32_0 : i32, i32
  }
  func.func @transform_7(%arg0: i32) -> (i32, i32) {
    %c0_i32 = arith.constant 0 : i32
    %c0_i32_0 = arith.constant 0 : i32
    return %arg0, %c0_i32 : i32, i32
  }
}

</mosaic_0001>

<bundles_post_ra>
// kernel: tpu_custom_call.1
= control target key start
LH: loop header
LB: loop body
LE: loop exit
PB: predicated region body
PF: predicated region fallthrough
CT: control target
= control target key end

     0   :  { %s2080_s0 = inlined_call_operand.hbm [shape: f32[8,64], index: 0, kind: input, shape index: {}]   ;;  %s2081_s1 = inlined_call_operand.hbm [shape: bf16[64,1024], index: 1, kind: input, shape index: {}]   ;;  %s2082_s2 = inlined_call_operand.hbm [shape: f32[1,1024], index: 2, kind: input, shape index: {}]   ;;  %s2083_s3 = inlined_call_operand.hbm [shape: bf16[1024,256], index: 3, kind: input, shape index: {}]   ;;  %s2084_s4 = inlined_call_operand.vmem [shape: f32[1,256], index: 4, kind: input, shape index: {}]   ;;  %s2085_s5 = inlined_call_operand.vmem [shape: f32[1,256], index: 5, kind: input, shape index: {}]   ;;  %s2086_s6 = inlined_call_operand.<no memory space> [shape: f32[1,1], index: 6, kind: input, shape index: {}]   ;;  %s2087_s7 = inlined_call_operand.vmem [shape: f32[8,1], index: 7, kind: output, shape index: {}]  }
   0x1   :  { %v12_v0 = vstv %s2086_s6 }
   0x2   :  { %13 = vst [vmem:[#allocation2] sm:$0x1] %v12_v0 }
   0x3   :  { %14 = vsyncpa [#allocation4], 0 }
   0x4   :  { %15 = vsyncpa [#allocation6], 0 }
   0x5   :  { %16 = vsyncpa [#allocation9], 0  ;;  %s1963_s26 = smov [#allocation5]  }
   0x6   :  { %s32_s27 = sshll.u32 %s1963_s26, 4  ;;  %s33_s27 = int_to_ptr.vmem [resolvable:$true] %s32_s27 }
   0x7   :  { %s1885_s28 = scalar_lea.vmem %s33_s27, 4096  ;;  %p1890_p1 = scmp.lt.s32.totalorder %s33_s27, %s33_s27 }
   0x8   :  { %p1886_p0 = scmp.ne.s32.totalorder %s33_s27, %s1885_s28  ;;  %p1891_p2 = scmp.lt.s32.totalorder %s1885_s28, %s1885_s28 }
   0xa   :  { %p1892_p3 = por %p1891_p2, %p1890_p1 }
   0xc   :  { %p1893_p4 = pnand %p1892_p3, %p1886_p0 }
   0xe   :  { %1896 = shalt.err (!%p1893_p4)
}
   0xf   :  { %s1964_s29 = smov 512   ;;  %s1965_s30 = smov 32  }
  0x10   :  { %38 = dma.hbm_to_vmem [thread:$0]  %s2081_s1, 4096, %s33_s27, [#allocation6], %s1964_s29, %s1964_s29, %s1965_s30  }
  0x11   :  { %s1966_s6 = smov [#allocation3]   ;;  %s1967_s11 = smov [#allocation7]  }
  0x12   :  { %s23_s10 = sshll.u32 %s1966_s6, 4  ;;  %s45_s12 = sshll.u32 %s1967_s11, 4  ;;  %s24_s10 = int_to_ptr.vmem [resolvable:$true] %s23_s10  ;;  %s46_s12 = int_to_ptr.vmem [resolvable:$true] %s45_s12 }
  0x13   :  { %s1905_s13 = scalar_lea.vmem %s24_s10, 128  ;;  %p1910_p6 = scmp.lt.s32.totalorder %s24_s10, %s24_s10 }
  0x14   :  { %p1906_p5 = scmp.ne.s32.totalorder %s24_s10, %s1905_s13  ;;  %p1911_p7 = scmp.lt.s32.totalorder %s1905_s13, %s1905_s13 }
  0x16   :  { %p1912_p8 = por %p1911_p7, %p1910_p6 }
  0x18   :  { %p1913_p9 = pnand %p1912_p8, %p1906_p5 }
  0x1a   :  { %1916 = shalt.err (!%p1913_p9)
}
  0x1b   :  { %26 = dma.hbm_to_vmem [thread:$0]  %s2080_s0, 128, %s24_s10, [#allocation4]  }
  0x1c   :  { %s1925_s16 = scalar_lea.vmem %s46_s12, 128  ;;  %p1930_p11 = scmp.lt.s32.totalorder %s46_s12, %s46_s12 }
  0x1d   :  { %p1926_p10 = scmp.ne.s32.totalorder %s46_s12, %s1925_s16  ;;  %p1931_p12 = scmp.lt.s32.totalorder %s1925_s16, %s1925_s16 }
  0x1f   :  { %p1932_p13 = por %p1931_p12, %p1930_p11 }
  0x21   :  { %p1933_p0 = pnand %p1932_p13, %p1926_p10 }
  0x23   :  { %1936 = shalt.err (!%p1933_p0)
}
  0x24   :  { %48 = dma.hbm_to_vmem [thread:$0]  %s2082_s2, 128, %s46_s12, [#allocation6]  }
  0x25   :  { %s1968_s18 = smov [#allocation8]  }
  0x26   :  { %s54_s19 = sshll.u32 %s1968_s18, 4  ;;  %s55_s19 = int_to_ptr.vmem [resolvable:$true] %s54_s19 }
  0x27   :  { %s1945_s20 = scalar_lea.vmem %s55_s19, 16384  ;;  %p1950_p2 = scmp.lt.s32.totalorder %s55_s19, %s55_s19 }
  0x28   :  { %p1946_p1 = scmp.ne.s32.totalorder %s55_s19, %s1945_s20  ;;  %p1951_p3 = scmp.lt.s32.totalorder %s1945_s20, %s1945_s20 }
  0x2a   :  { %p1952_p4 = por %p1951_p3, %p1950_p2 }
  0x2c   :  { %p1953_p5 = pnand %p1952_p4, %p1946_p1 }
  0x2e   :  { %1956 = shalt.err (!%p1953_p5)
}
  0x2f   :  { %s1969_s0 = smov 128   ;;  %s1970_s21 = smov 8  }
  0x30   :  { %60 = dma.hbm_to_vmem [thread:$0]  %s2083_s3, 16384, %s55_s19, [#allocation9], %s1969_s0, %s1969_s0, %s1970_s21  }
  0x31   :  { %1957 = dma.done.wait [#allocation4], 128  }
  0x32   :  { %1958 = vsyncadd [#allocation4], 4294967168 }
  0x33   :  { %1959 = dma.done.wait [#allocation6], 4224  }
  0x34   :  { %1960 = vsyncadd [#allocation6], 4294963072 }
  0x35   :  { %1961 = dma.done.wait [#allocation9], 16384  }
  0x36   :  { %1962 = vsyncadd [#allocation9], 4294950912  ;;  %v1971_v1 = vmov 0   ;;  %v106_v2 = vld [vmem:[#allocation5 + $0xc0] sm:$0xff]  ;;  %v107_v4 = vld [vmem:[#allocation5 + $0xc8] sm:$0xff]  ;;  %vm316_vm0 = vcmask 523264  }
  0x37   :  { %352 = vmatprep.mubr.bf16.mxu0 %v1971_v1  ;;  %393 = vmatprep.mubr.bf16.mxu1 %v1971_v1  ;;  %v110_v3 = vld [vmem:[#allocation5 + $0xe0] sm:$0xff]  ;;  %v111_v6 = vld [vmem:[#allocation5 + $0xe8] sm:$0xff]  ;;  %v108_v32 = vld [vmem:[#allocation5 + $0xd0] sm:$0xff]  ;;  %vm1497_vm11 = vcmask 7168  }
  0x38   :  { %v1531_v5 = vcombine.high %v106_v2, %v110_v3  ;;  %v1530_v7 = vcombine.low %v106_v2, %v110_v3  ;;  %v98_v8 = vld [vmem:[#allocation5 + $0x80] sm:$0xff]  ;;  %v1533_v10 = vcombine.high %v107_v4, %v111_v6  ;;  %v1532_v11 = vcombine.low %v107_v4, %v111_v6  ;;  %v99_v13 = vld [vmem:[#allocation5 + $0x88] sm:$0xff]  ;;  %v112_v33 = vld [vmem:[#allocation5 + $0xf0] sm:$0xff] }
  0x39   :  { %v102_v9 = vld [vmem:[#allocation5 + $0xa0] sm:$0xff]  ;;  %v103_v14 = vld [vmem:[#allocation5 + $0xa8] sm:$0xff]  ;;  %v109_v34 = vld [vmem:[#allocation5 + $0xd8] sm:$0xff]  ;;  %v1535_v39 = vcombine.high %v108_v32, %v112_v33  ;;  %v1534_v46 = vcombine.low %v108_v32, %v112_v33 }
  0x3a   :  { %v1523_v12 = vcombine.high %v98_v8, %v102_v9  ;;  %v90_v15 = vld [vmem:[#allocation5 + $0x40] sm:$0xff]  ;;  %328 = vmatprep.subr.bf16.mxu0 %v1531_v5  ;;  %v1525_v16 = vcombine.high %v99_v13, %v103_v14  ;;  %v91_v18 = vld [vmem:[#allocation5 + $0x48] sm:$0xff]  ;;  %369 = vmatprep.subr.bf16.mxu1 %v1533_v10  ;;  %v1522_v20 = vcombine.low %v98_v8, %v102_v9  ;;  %v113_v35 = vld [vmem:[#allocation5 + $0xf8] sm:$0xff] }
  0x3b   :  { %v94_v17 = vld [vmem:[#allocation5 + $0x60] sm:$0xff]  ;;  %v95_v19 = vld [vmem:[#allocation5 + $0x68] sm:$0xff]  ;;  %329 = vmatpush1.bf16.msra.mxu0 %v1530_v7  ;;  %370 = vmatpush1.bf16.msra.mxu1 %v1532_v11  ;;  %v1524_v21 = vcombine.low %v99_v13, %v103_v14  ;;  %v80_v37 = vld [vmem:[#allocation3] sm:$0xff]  ;;  %v1537_v41 = vcombine.high %v109_v34, %v113_v35  ;;  %v1536_v47 = vcombine.low %v109_v34, %v113_v35 }
  0x3c   :  { %330 = vmatprep.subr.bf16.mxu0 %v1523_v12  ;;  %v1515_v22 = vcombine.high %v90_v15, %v94_v17  ;;  %371 = vmatprep.subr.bf16.mxu1 %v1525_v16  ;;  %v1517_v23 = vcombine.high %v91_v18, %v95_v19  ;;  %v82_v24 = vld [vmem:[#allocation5] sm:$0xff]  ;;  %v83_v26 = vld [vmem:[#allocation5 + $0x8] sm:$0xff]  ;;  %v1514_v28 = vcombine.low %v90_v15, %v94_v17  ;;  %v100_v40 = vld [vmem:[#allocation5 + $0x90] sm:$0xff] }
  0x3d   :  { %v86_v25 = vld [vmem:[#allocation5 + $0x20] sm:$0xff]  ;;  %v87_v27 = vld [vmem:[#allocation5 + $0x28] sm:$0xff]  ;;  %v1516_v29 = vcombine.low %v91_v18, %v95_v19  ;;  %v104_v42 = vld [vmem:[#allocation5 + $0xb0] sm:$0xff]  ;;  %v81_v44 = vpack.c.bf16 %v80_v37, %v80_v37 }
  0x3e   :  { %v1507_v30 = vcombine.high %v82_v24, %v86_v25  ;;  %v1509_v31 = vcombine.high %v83_v26, %v87_v27  ;;  %v1506_v36 = vcombine.low %v82_v24, %v86_v25  ;;  %v1508_v38 = vcombine.low %v83_v26, %v87_v27  ;;  %v101_v43 = vld [vmem:[#allocation5 + $0x98] sm:$0xff]  ;;  %v92_v49 = vld [vmem:[#allocation5 + $0x50] sm:$0xff] }
  0x3f   :  { %331 = vmatpush1.bf16.msra.mxu0 %v1522_v20  ;;  %372 = vmatpush1.bf16.msra.mxu1 %v1524_v21  ;;  %v105_v45 = vld [vmem:[#allocation5 + $0xb8] sm:$0xff]  ;;  %v1527_v48 = vcombine.high %v100_v40, %v104_v42  ;;  %v96_v51 = vld [vmem:[#allocation5 + $0x70] sm:$0xff]  ;;  %v1526_v54 = vcombine.low %v100_v40, %v104_v42 }
  0x40   :  { %332 = vmatprep.subr.bf16.mxu0 %v1515_v22  ;;  %373 = vmatprep.subr.bf16.mxu1 %v1517_v23  ;;  %v1529_v50 = vcombine.high %v101_v43, %v105_v45  ;;  %v93_v52 = vld [vmem:[#allocation5 + $0x58] sm:$0xff]  ;;  %v1528_v55 = vcombine.low %v101_v43, %v105_v45  ;;  %v1519_v56 = vcombine.high %v92_v49, %v96_v51  ;;  %v84_v57 = vld [vmem:[#allocation5 + $0x10] sm:$0xff] }
  0x41   :  { %v97_v53 = vld [vmem:[#allocation5 + $0x78] sm:$0xff]  ;;  %v88_v59 = vld [vmem:[#allocation5 + $0x30] sm:$0xff]  ;;  %v1518_v62 = vcombine.low %v92_v49, %v96_v51 }
  0x42   :  { %v1521_v58 = vcombine.high %v93_v52, %v97_v53  ;;  %v85_v60 = vld [vmem:[#allocation5 + $0x18] sm:$0xff]  ;;  %v1520_v63 = vcombine.low %v93_v52, %v97_v53  ;;  %v1511_v0 = vcombine.high %v84_v57, %v88_v59  ;;  %v1510_v3 = vcombine.low %v84_v57, %v88_v59  ;;  %v1689_v8 = vld [vmem:[#allocation8 + $0x64] ss:$8 sps:$4 sm:$0xff]   ;;  %v1687_v10 = vld [vmem:[#allocation8 + $0x60] ss:$8 sps:$4 sm:$0xff]  }
  0x43   :  { %333 = vmatpush1.bf16.msra.mxu0 %v1514_v28  ;;  %374 = vmatpush1.bf16.msra.mxu1 %v1516_v29  ;;  %v89_v61 = vld [vmem:[#allocation5 + $0x38] sm:$0xff]  ;;  %v1692_v9 = vld [vmem:[#allocation8 + $0x164] ss:$8 sps:$4 sm:$0xff]   ;;  %v1690_v11 = vld [vmem:[#allocation8 + $0x160] ss:$8 sps:$4 sm:$0xff]  }
  0x44   :  { %334 = vmatprep.subr.bf16.mxu0 %v1507_v30  ;;  %375 = vmatprep.subr.bf16.mxu1 %v1509_v31  ;;  %v1513_v2 = vcombine.high %v85_v60, %v89_v61  ;;  %v1512_v4 = vcombine.low %v85_v60, %v89_v61  ;;  %v1683_v5 = vld [vmem:[#allocation8 + $0x74] ss:$8 sps:$4 sm:$0xff]   ;;  %v1681_v7 = vld [vmem:[#allocation8 + $0x70] ss:$8 sps:$4 sm:$0xff]   ;;  %v1701_v16 = vld [vmem:[#allocation8 + $0x44] ss:$8 sps:$4 sm:$0xff]  }
  0x45   :  { %v1686_v6 = vld [vmem:[#allocation8 + $0x174] ss:$8 sps:$4 sm:$0xff]   ;;  %v1693_v14 = vld [vmem:[#allocation8 + $0x50] ss:$8 sps:$4 sm:$0xff]   ;;  %v1704_v17 = vld [vmem:[#allocation8 + $0x144] ss:$8 sps:$4 sm:$0xff]  }
  0x46   :  { %v1695_v12 = vld [vmem:[#allocation8 + $0x54] ss:$8 sps:$4 sm:$0xff]   ;;  %v1696_v15 = vld [vmem:[#allocation8 + $0x150] ss:$8 sps:$4 sm:$0xff]   ;;  %v1699_v18 = vld [vmem:[#allocation8 + $0x40] ss:$8 sps:$4 sm:$0xff]  }
  0x47   :  { %335 = vmatpush1.bf16.msra.mxu0 %v1506_v36  ;;  %376 = vmatpush1.bf16.msra.mxu1 %v1508_v38  ;;  %v1698_v13 = vld [vmem:[#allocation8 + $0x154] ss:$8 sps:$4 sm:$0xff]   ;;  %v1702_v19 = vld [vmem:[#allocation8 + $0x140] ss:$8 sps:$4 sm:$0xff]   ;;  %v1705_v21 = vld [vmem:[#allocation8 + $0x30] ss:$8 sps:$4 sm:$0xff]  }
  0x48   :  { %410 = vmatprep.subr.bf16.mxu0 %v1535_v39  ;;  %451 = vmatprep.subr.bf16.mxu1 %v1537_v41  ;;  %v1707_v20 = vld [vmem:[#allocation8 + $0x34] ss:$8 sps:$4 sm:$0xff]   ;;  %v1708_v23 = vld [vmem:[#allocation8 + $0x130] ss:$8 sps:$4 sm:$0xff]   ;;  %v1713_v24 = vld [vmem:[#allocation8 + $0x24] ss:$8 sps:$4 sm:$0xff]  }
  0x49   :  { %v1710_v22 = vld [vmem:[#allocation8 + $0x134] ss:$8 sps:$4 sm:$0xff]   ;;  %v1716_v25 = vld [vmem:[#allocation8 + $0x124] ss:$8 sps:$4 sm:$0xff]   ;;  %v1711_v26 = vld [vmem:[#allocation8 + $0x20] ss:$8 sps:$4 sm:$0xff]  }
  0x4a   :  { %1538 = vmatmul.mubr.msk.bf16.vlgmr.msra.gmra.mxu0 %vm316_vm0, %v81_v44  ;;  %1539 = vmatmul.mubr.msk.bf16.vlgmr.msra.gmra.mxu1 %vm316_vm0, %v81_v44  ;;  %v1714_v27 = vld [vmem:[#allocation8 + $0x120] ss:$8 sps:$4 sm:$0xff]   ;;  %v1719_v28 = vld [vmem:[#allocation8 + $0x14] ss:$8 sps:$4 sm:$0xff]   ;;  %v1717_v30 = vld [vmem:[#allocation8 + $0x10] ss:$8 sps:$4 sm:$0xff]  }
  0x4b   :  { %411 = vmatpush1.bf16.msra.mxu0 %v1534_v46  ;;  %452 = vmatpush1.bf16.msra.mxu1 %v1536_v47  ;;  %v1722_v29 = vld [vmem:[#allocation8 + $0x114] ss:$8 sps:$4 sm:$0xff]   ;;  %v1720_v31 = vld [vmem:[#allocation8 + $0x110] ss:$8 sps:$4 sm:$0xff]   ;;  %v1725_v32 = vld [vmem:[#allocation8 + $0x4] ss:$8 sps:$4 sm:$0xff]  }
  0x4c   :  { %412 = vmatprep.subr.bf16.mxu0 %v1527_v48  ;;  %453 = vmatprep.subr.bf16.mxu1 %v1529_v50  ;;  %v1728_v33 = vld [vmem:[#allocation8 + $0x104] ss:$8 sps:$4 sm:$0xff]   ;;  %v1723_v34 = vld [vmem:[#allocation8] ss:$8 sps:$4 sm:$0xff]   ;;  %v1731_v36 = vld [vmem:[#allocation8 + $0xf4] ss:$8 sps:$4 sm:$0xff]  }
  0x4d   :  { %434 = vmatprep.mubr.bf16.mxu0 %v1971_v1  ;;  %475 = vmatprep.mubr.bf16.mxu1 %v1971_v1  ;;  %v1684_v1 = vld [vmem:[#allocation8 + $0x170] ss:$8 sps:$4 sm:$0xff]   ;;  %v1726_v35 = vld [vmem:[#allocation8 + $0x100] ss:$8 sps:$4 sm:$0xff]   ;;  %v1734_v37 = vld [vmem:[#allocation8 + $0x1f4] ss:$8 sps:$4 sm:$0xff]  }
  0x4e   :  { %v1729_v38 = vld [vmem:[#allocation8 + $0xf0] ss:$8 sps:$4 sm:$0xff]   ;;  %v1737_v40 = vld [vmem:[#allocation8 + $0xe4] ss:$8 sps:$4 sm:$0xff]   ;;  %v1735_v42 = vld [vmem:[#allocation8 + $0xe0] ss:$8 sps:$4 sm:$0xff]  }
  0x4f   :  { %413 = vmatpush1.bf16.msra.mxu0 %v1526_v54  ;;  %454 = vmatpush1.bf16.msra.mxu1 %v1528_v55  ;;  %v1732_v39 = vld [vmem:[#allocation8 + $0x1f0] ss:$8 sps:$4 sm:$0xff]   ;;  %v1740_v41 = vld [vmem:[#allocation8 + $0x1e4] ss:$8 sps:$4 sm:$0xff]   ;;  %v1738_v43 = vld [vmem:[#allocation8 + $0x1e0] ss:$8 sps:$4 sm:$0xff]  }
  0x50   :  { %414 = vmatprep.subr.bf16.mxu0 %v1519_v56  ;;  %455 = vmatprep.subr.bf16.mxu1 %v1521_v58  ;;  %v1746_v45 = vld [vmem:[#allocation8 + $0x1d4] ss:$8 sps:$4 sm:$0xff]   ;;  %v1741_v46 = vld [vmem:[#allocation8 + $0xd0] ss:$8 sps:$4 sm:$0xff]   ;;  %v1749_v48 = vld [vmem:[#allocation8 + $0xc4] ss:$8 sps:$4 sm:$0xff]  }
  0x51   :  { %v1744_v47 = vld [vmem:[#allocation8 + $0x1d0] ss:$8 sps:$4 sm:$0xff]   ;;  %v1752_v49 = vld [vmem:[#allocation8 + $0x1c4] ss:$8 sps:$4 sm:$0xff]   ;;  %v1747_v50 = vld [vmem:[#allocation8 + $0xc0] ss:$8 sps:$4 sm:$0xff]  }
  0x52   :  { %v1750_v51 = vld [vmem:[#allocation8 + $0x1c0] ss:$8 sps:$4 sm:$0xff]   ;;  %v1755_v52 = vld [vmem:[#allocation8 + $0xb4] ss:$8 sps:$4 sm:$0xff]   ;;  %v1753_v54 = vld [vmem:[#allocation8 + $0xb0] ss:$8 sps:$4 sm:$0xff]  }
  0x53   :  { %415 = vmatpush1.bf16.msra.mxu0 %v1518_v62  ;;  %456 = vmatpush1.bf16.msra.mxu1 %v1520_v63  ;;  %v1758_v53 = vld [vmem:[#allocation8 + $0x1b4] ss:$8 sps:$4 sm:$0xff]   ;;  %v1756_v55 = vld [vmem:[#allocation8 + $0x1b0] ss:$8 sps:$4 sm:$0xff]   ;;  %v1761_v56 = vld [vmem:[#allocation8 + $0xa4] ss:$8 sps:$4 sm:$0xff]  }
  0x54   :  { %416 = vmatprep.subr.bf16.mxu0 %v1511_v0  ;;  %457 = vmatprep.subr.bf16.mxu1 %v1513_v2  ;;  %v1764_v57 = vld [vmem:[#allocation8 + $0x1a4] ss:$8 sps:$4 sm:$0xff]   ;;  %v1759_v58 = vld [vmem:[#allocation8 + $0xa0] ss:$8 sps:$4 sm:$0xff]   ;;  %v1767_v60 = vld [vmem:[#allocation8 + $0x94] ss:$8 sps:$4 sm:$0xff]  }
  0x55   :  { %v1762_v59 = vld [vmem:[#allocation8 + $0x1a0] ss:$8 sps:$4 sm:$0xff]   ;;  %v1770_v61 = vld [vmem:[#allocation8 + $0x194] ss:$8 sps:$4 sm:$0xff]   ;;  %v1765_v62 = vld [vmem:[#allocation8 + $0x90] ss:$8 sps:$4 sm:$0xff]  }
  0x56   :  { %v1768_v63 = vld [vmem:[#allocation8 + $0x190] ss:$8 sps:$4 sm:$0xff]   ;;  %v1773_v0 = vld [vmem:[#allocation8 + $0x84] ss:$8 sps:$4 sm:$0xff]  }
  0x57   :  { %417 = vmatpush1.bf16.msra.mxu0 %v1510_v3  ;;  %458 = vmatpush1.bf16.msra.mxu1 %v1512_v4  ;;  %v1776_v2 = vld [vmem:[#allocation8 + $0x184] ss:$8 sps:$4 sm:$0xff]   ;;  %v1771_v3 = vld [vmem:[#allocation8 + $0x80] ss:$8 sps:$4 sm:$0xff]  }
  0x58   :  { %1296 = vmatprep.subr.bf16.mxu0 %v1683_v5  ;;  %1337 = vmatprep.subr.bf16.mxu1 %v1686_v6  ;;  %v1774_v4 = vld [vmem:[#allocation8 + $0x180] ss:$8 sps:$4 sm:$0xff]   ;;  %v1779_v5 = vld [vmem:[#allocation8 + $0x274] ss:$8 sps:$4 sm:$0xff]  }
  0x59   :  { %v1782_v6 = vld [vmem:[#allocation8 + $0x374] ss:$8 sps:$4 sm:$0xff]  }
  0x5a   :  { %1540 = vmatmul.mubr.msk.bf16.vlgmr.msra.gmra.mxu0 %vm316_vm0, %v81_v44  ;;  %1541 = vmatmul.mubr.msk.bf16.vlgmr.msra.gmra.mxu1 %vm316_vm0, %v81_v44  ;;  %v1743_v44 = vld [vmem:[#allocation8 + $0xd4] ss:$8 sps:$4 sm:$0xff]  }
  0x5b   :  { %1297 = vmatpush1.bf16.msra.mxu0 %v1681_v7  ;;  %1338 = vmatpush1.bf16.msra.mxu1 %v1684_v1  ;;  %v116_v7 = vlaneseq }
  0x5c   :  { %1298 = vmatprep.subr.bf16.mxu0 %v1689_v8  ;;  %1339 = vmatprep.subr.bf16.mxu1 %v1692_v9  ;;  %v2040_v9 = vld [vmem:[#allocation7] sm:$0xff] }
  0x5d   :  { %v2035_v1 = vshrl.u32 %v116_v7, 7 }
  0x5f   :  { %1299 = vmatpush1.bf16.msra.mxu0 %v1687_v10  ;;  %1340 = vmatpush1.bf16.msra.mxu1 %v1690_v11  ;;  %v2038_v8 = vsub.s32 0, %v2035_v1  ;;  %v126_v10 = vsub.s32 2, %v2035_v1  ;;  %v2044_v11 = vsub.s32 1, %v2035_v1 }
  0x60   :  { %1300 = vmatprep.subr.bf16.mxu0 %v1695_v12  ;;  %1341 = vmatprep.subr.bf16.mxu1 %v1698_v13  ;;  %v130_v12 = vsub.s32 3, %v2035_v1 }
  0x61   :  { %v119_v13 = vrot.slane %v2040_v9, %v2038_v8 }
  0x63   :  { %1301 = vmatpush1.bf16.msra.mxu0 %v1693_v14  ;;  %1342 = vmatpush1.bf16.msra.mxu1 %v1696_v15  ;;  %v127_v14 = vrot.slane %v2040_v9, %v126_v10  ;;  %v123_v15 = vrot.slane %v2040_v9, %v2044_v11 }
  0x64   :  { %1302 = vmatprep.subr.bf16.mxu0 %v1701_v16  ;;  %1343 = vmatprep.subr.bf16.mxu1 %v1704_v17  ;;  %v131_v17 = vrot.slane %v2040_v9, %v130_v12 }
  0x67   :  { %1303 = vmatpush1.bf16.msra.mxu0 %v1699_v18  ;;  %1344 = vmatpush1.bf16.msra.mxu1 %v1702_v19 }
  0x68   :  { %1304 = vmatprep.subr.bf16.mxu0 %v1707_v20  ;;  %1345 = vmatprep.subr.bf16.mxu1 %v1710_v22 }
  0x6b   :  { %1305 = vmatpush1.bf16.msra.mxu0 %v1705_v21  ;;  %1346 = vmatpush1.bf16.msra.mxu1 %v1708_v23 }
  0x6c   :  { %1306 = vmatprep.subr.bf16.mxu0 %v1713_v24  ;;  %1347 = vmatprep.subr.bf16.mxu1 %v1716_v25 }
  0x6f   :  { %1307 = vmatpush1.bf16.msra.mxu0 %v1711_v26  ;;  %1348 = vmatpush1.bf16.msra.mxu1 %v1714_v27 }
  0x70   :  { %1308 = vmatprep.subr.bf16.mxu0 %v1719_v28  ;;  %1349 = vmatprep.subr.bf16.mxu1 %v1722_v29 }
  0x73   :  { %1309 = vmatpush1.bf16.msra.mxu0 %v1717_v30  ;;  %1350 = vmatpush1.bf16.msra.mxu1 %v1720_v31 }
  0x74   :  { %1310 = vmatprep.subr.bf16.mxu0 %v1725_v32  ;;  %1351 = vmatprep.subr.bf16.mxu1 %v1728_v33 }
  0x77   :  { %1311 = vmatpush1.bf16.msra.mxu0 %v1723_v34  ;;  %1352 = vmatpush1.bf16.msra.mxu1 %v1726_v35 }
  0x78   :  { %1312 = vmatprep.subr.bf16.mxu0 %v1731_v36  ;;  %1353 = vmatprep.subr.bf16.mxu1 %v1734_v37 }
  0x7b   :  { %1313 = vmatpush2.bf16.msra.mxu0 %v1729_v38  ;;  %1354 = vmatpush2.bf16.msra.mxu1 %v1732_v39  ;;  %v1777_v38 = vld [vmem:[#allocation8 + $0x270] ss:$8 sps:$4 sm:$0xff]  }
  0x7c   :  { %1314 = vmatprep.subr.bf16.mxu0 %v1737_v40  ;;  %1355 = vmatprep.subr.bf16.mxu1 %v1740_v41  ;;  %v1780_v41 = vld [vmem:[#allocation8 + $0x370] ss:$8 sps:$4 sm:$0xff]  }
  0x7f   :  { %1315 = vmatpush2.bf16.msra.mxu0 %v1735_v42  ;;  %1356 = vmatpush2.bf16.msra.mxu1 %v1738_v43  ;;  %v1785_v42 = vld [vmem:[#allocation8 + $0x264] ss:$8 sps:$4 sm:$0xff]  }
  0x80   :  { %1316 = vmatprep.subr.bf16.mxu0 %v1743_v44  ;;  %1357 = vmatprep.subr.bf16.mxu1 %v1746_v45  ;;  %v1788_v44 = vld [vmem:[#allocation8 + $0x364] ss:$8 sps:$4 sm:$0xff]   ;;  %v138_v45 = vsub.s32 5, %v2035_v1 }
  0x83   :  { %1317 = vmatpush2.bf16.msra.mxu0 %v1741_v46  ;;  %1358 = vmatpush2.bf16.msra.mxu1 %v1744_v47  ;;  %v1783_v46 = vld [vmem:[#allocation8 + $0x260] ss:$8 sps:$4 sm:$0xff]   ;;  %v146_v47 = vsub.s32 7, %v2035_v1 }
  0x84   :  { %1318 = vmatprep.subr.bf16.mxu0 %v1749_v48  ;;  %1359 = vmatprep.subr.bf16.mxu1 %v1752_v49  ;;  %v1786_v48 = vld [vmem:[#allocation8 + $0x360] ss:$8 sps:$4 sm:$0xff]   ;;  %v1791_v49 = vld [vmem:[#allocation8 + $0x254] ss:$8 sps:$4 sm:$0xff]  }
  0x87   :  { %1319 = vmatpush2.bf16.msra.mxu0 %v1747_v50  ;;  %1360 = vmatpush2.bf16.msra.mxu1 %v1750_v51  ;;  %v1794_v50 = vld [vmem:[#allocation8 + $0x354] ss:$8 sps:$4 sm:$0xff]   ;;  %v139_v51 = vrot.slane %v2040_v9, %v138_v45  ;;  %v1843_v45 = vld [vmem:[#allocation8 + $0x2c0] ss:$8 sps:$4 sm:$0xff]  }
  0x88   :  { %1320 = vmatprep.subr.bf16.mxu0 %v1755_v52  ;;  %1361 = vmatprep.subr.bf16.mxu1 %v1758_v53  ;;  %v1789_v52 = vld [vmem:[#allocation8 + $0x250] ss:$8 sps:$4 sm:$0xff]  }
  0x8b   :  { %1321 = vmatpush2.bf16.msra.mxu0 %v1753_v54  ;;  %1362 = vmatpush2.bf16.msra.mxu1 %v1756_v55  ;;  %v147_v54 = vrot.slane %v2040_v9, %v146_v47  ;;  %v1792_v55 = vld [vmem:[#allocation8 + $0x350] ss:$8 sps:$4 sm:$0xff]   ;;  %v1851_v47 = vld [vmem:[#allocation8 + $0x2b4] ss:$8 sps:$4 sm:$0xff]  }
  0x8c   :  { %1322 = vmatprep.subr.bf16.mxu0 %v1761_v56  ;;  %1363 = vmatprep.subr.bf16.mxu1 %v1764_v57  ;;  %v1797_v56 = vld [vmem:[#allocation8 + $0x244] ss:$8 sps:$4 sm:$0xff]  }
  0x8f   :  { %1323 = vmatpush2.bf16.msra.mxu0 %v1759_v58  ;;  %1364 = vmatpush2.bf16.msra.mxu1 %v1762_v59  ;;  %v1800_v58 = vld [vmem:[#allocation8 + $0x344] ss:$8 sps:$4 sm:$0xff]  }
  0x90   :  { %1324 = vmatprep.subr.bf16.mxu0 %v1767_v60  ;;  %1365 = vmatprep.subr.bf16.mxu1 %v1770_v61 }
  0x93   :  { %1325 = vmatpush2.bf16.msra.mxu0 %v1765_v62  ;;  %1366 = vmatpush2.bf16.msra.mxu1 %v1768_v63  ;;  %v1795_v62 = vld [vmem:[#allocation8 + $0x240] ss:$8 sps:$4 sm:$0xff]  }
  0x94   :  { %1326 = vmatprep.subr.bf16.mxu0 %v1773_v0  ;;  %1367 = vmatprep.subr.bf16.mxu1 %v1776_v2  ;;  %v1798_v63 = vld [vmem:[#allocation8 + $0x340] ss:$8 sps:$4 sm:$0xff]  }
  0x97   :  { %1327 = vmatpush2.bf16.msra.mxu0 %v1771_v3  ;;  %1368 = vmatpush2.bf16.msra.mxu1 %v1774_v4  ;;  %v1803_v3 = vld [vmem:[#allocation8 + $0x234] ss:$8 sps:$4 sm:$0xff]  }
  0x98   :  { %1378 = vmatprep.subr.bf16.mxu0 %v1779_v5  ;;  %1419 = vmatprep.subr.bf16.mxu1 %v1782_v6  ;;  %v1806_v6 = vld [vmem:[#allocation8 + $0x334] ss:$8 sps:$4 sm:$0xff]  }
 0x10a   :  { %v354_v16 = vpop.f32.mrf.mxu0  ;;  %v395_v19 = vpop.f32.mrf.mxu1 }
 0x10b   :  { %v355_v18 = vadd.f32 %v354_v16, %v119_v13  ;;  %v396_v20 = vadd.f32 %v395_v19, %v127_v14  ;;  %v1801_v14 = vld [vmem:[#allocation8 + $0x230] ss:$8 sps:$4 sm:$0xff]  }
 0x10c   :  { %v356_v21 = vpop.f32.mrf.mxu0  ;;  %v397_v24 = vpop.f32.mrf.mxu1 }
 0x10d   :  { %vm484_vm1 = vcmp.gt.f32.partialorder %v355_v18, 0.0  ;;  %v492_v22 = vmul.f32 0.2, %v355_v18  ;;  %v357_v23 = vadd.f32 %v356_v21, %v123_v15  ;;  %vm486_vm2 = vcmp.gt.f32.partialorder %v396_v20, 0.0  ;;  %v1807_v21 = vld [vmem:[#allocation8 + $0x220] ss:$8 sps:$4 sm:$0xff]  }
 0x10e   :  { %v494_v25 = vmul.f32 0.2, %v396_v20  ;;  %v398_v26 = vadd.f32 %v397_v24, %v131_v17  ;;  %v358_v27 = vpop.f32.mrf.mxu0  ;;  %v399_v29 = vpop.f32.mrf.mxu1  ;;  %v1804_v17 = vld [vmem:[#allocation8 + $0x330] ss:$8 sps:$4 sm:$0xff]   ;;  %v1818_v24 = vld [vmem:[#allocation8 + $0x314] ss:$8 sps:$4 sm:$0xff]  }
 0x10f   :  { %vm485_vm3 = vcmp.gt.f32.partialorder %v357_v23, 0.0  ;;  %v493_v28 = vmul.f32 0.2, %v357_v23  ;;  %v500_v30 = vsel %vm484_vm1, %v355_v18, %v492_v22  ;;  %v1809_v18 = vld [vmem:[#allocation8 + $0x224] ss:$8 sps:$4 sm:$0xff]  }
 0x110   :  { %vm487_vm4 = vcmp.gt.f32.partialorder %v398_v26, 0.0  ;;  %v495_v31 = vmul.f32 0.2, %v398_v26  ;;  %v359_v32 = vpop.f32.mrf.mxu0  ;;  %v502_v33 = vsel %vm486_vm2, %v396_v20, %v494_v25  ;;  %v400_v34 = vpop.f32.mrf.mxu1  ;;  %v508_v39 = vpack.c.bf16 %v500_v30, %v500_v30  ;;  %v1812_v20 = vld [vmem:[#allocation8 + $0x324] ss:$8 sps:$4 sm:$0xff]  }
 0x111   :  { %v501_v35 = vsel %vm485_vm3, %v357_v23, %v493_v28  ;;  %v510_v43 = vpack.c.bf16 %v502_v33, %v502_v33  ;;  %v1810_v22 = vld [vmem:[#allocation8 + $0x320] ss:$8 sps:$4 sm:$0xff]   ;;  %v1815_v23 = vld [vmem:[#allocation8 + $0x214] ss:$8 sps:$4 sm:$0xff]   ;;  %v1813_v25 = vld [vmem:[#allocation8 + $0x210] ss:$8 sps:$4 sm:$0xff]  }
 0x112   :  { %v509_v36 = vpack.c.bf16 %v501_v35, %v501_v35  ;;  %v503_v37 = vsel %vm487_vm4, %v398_v26, %v495_v31  ;;  %v1816_v26 = vld [vmem:[#allocation8 + $0x310] ss:$8 sps:$4 sm:$0xff]   ;;  %v1821_v27 = vld [vmem:[#allocation8 + $0x204] ss:$8 sps:$4 sm:$0xff]   ;;  %v1819_v29 = vld [vmem:[#allocation8 + $0x200] ss:$8 sps:$4 sm:$0xff]  }
 0x113   :  { %v511_v40 = vpack.c.bf16 %v503_v37, %v503_v37  ;;  %v1824_v28 = vld [vmem:[#allocation8 + $0x304] ss:$8 sps:$4 sm:$0xff]   ;;  %v1822_v30 = vld [vmem:[#allocation8 + $0x300] ss:$8 sps:$4 sm:$0xff]   ;;  %v1827_v31 = vld [vmem:[#allocation8 + $0x2f4] ss:$8 sps:$4 sm:$0xff]  }
 0x114   :  { %1328 = vmatprep.mubr.bf16.mxu0 %v509_v36  ;;  %v1830_v32 = vld [vmem:[#allocation8 + $0x3f4] ss:$8 sps:$4 sm:$0xff]   ;;  %v1825_v33 = vld [vmem:[#allocation8 + $0x2f0] ss:$8 sps:$4 sm:$0xff]   ;;  %v1833_v35 = vld [vmem:[#allocation8 + $0x2e4] ss:$8 sps:$4 sm:$0xff]  }
 0x115   :  { %1369 = vmatprep.mubr.bf16.mxu1 %v511_v40  ;;  %1329 = vmatmul.mubr.bf16.vlgmr.msra.gmra.mxu0 %v508_v39  ;;  %v1828_v34 = vld [vmem:[#allocation8 + $0x3f0] ss:$8 sps:$4 sm:$0xff]   ;;  %v1836_v36 = vld [vmem:[#allocation8 + $0x3e4] ss:$8 sps:$4 sm:$0xff]   ;;  %v1831_v37 = vld [vmem:[#allocation8 + $0x2e0] ss:$8 sps:$4 sm:$0xff]  }
 0x116   :  { %1370 = vmatmul.mubr.bf16.vlgmr.msra.gmra.mxu1 %v510_v43  ;;  %1379 = vmatpush1.bf16.msra.mxu0 %v1777_v38  ;;  %v1834_v38 = vld [vmem:[#allocation8 + $0x3e0] ss:$8 sps:$4 sm:$0xff]   ;;  %v1839_v39 = vld [vmem:[#allocation8 + $0x2d4] ss:$8 sps:$4 sm:$0xff]   ;;  %v1845_v43 = vld [vmem:[#allocation8 + $0x2c4] ss:$8 sps:$4 sm:$0xff]  }
 0x117   :  { %1420 = vmatpush1.bf16.msra.mxu1 %v1780_v41  ;;  %1380 = vmatprep.subr.bf16.mxu0 %v1785_v42  ;;  %v1842_v40 = vld [vmem:[#allocation8 + $0x3d4] ss:$8 sps:$4 sm:$0xff]   ;;  %v1837_v41 = vld [vmem:[#allocation8 + $0x2d0] ss:$8 sps:$4 sm:$0xff]  }
 0x118   :  { %1421 = vmatprep.subr.bf16.mxu1 %v1788_v44  ;;  %v1840_v42 = vld [vmem:[#allocation8 + $0x3d0] ss:$8 sps:$4 sm:$0xff]   ;;  %v1848_v44 = vld [vmem:[#allocation8 + $0x3c4] ss:$8 sps:$4 sm:$0xff]  }
 0x11a   :  { %1381 = vmatpush1.bf16.msra.mxu0 %v1783_v46  ;;  %v2056_v53 = vpop.f32.mrf.mxu0  ;;  %v2059_v57 = vpop.f32.mrf.mxu1  ;;  %v1846_v46 = vld [vmem:[#allocation8 + $0x3c0] ss:$8 sps:$4 sm:$0xff]  }
 0x11b   :  { %1422 = vmatpush1.bf16.msra.mxu1 %v1786_v48  ;;  %1382 = vmatprep.subr.bf16.mxu0 %v1791_v49  ;;  %v134_v48 = vsub.s32 4, %v2035_v1  ;;  %v1854_v49 = vld [vmem:[#allocation8 + $0x3b4] ss:$8 sps:$4 sm:$0xff]  }
 0x11c   :  { %1423 = vmatprep.subr.bf16.mxu1 %v1794_v50  ;;  %v438_v59 = vpop.f32.mrf.mxu0  ;;  %v479_v61 = vpop.f32.mrf.mxu1  ;;  %v142_v50 = vsub.s32 6, %v2035_v1 }
 0x11d   :  { %v439_v60 = vadd.f32 %v438_v59, %v139_v51  ;;  %v480_v2 = vadd.f32 %v479_v61, %v147_v54  ;;  %v1849_v51 = vld [vmem:[#allocation8 + $0x2b0] ss:$8 sps:$4 sm:$0xff]   ;;  %v1857_v54 = vld [vmem:[#allocation8 + $0x2a4] ss:$8 sps:$4 sm:$0xff]   ;;  %v1855_v59 = vld [vmem:[#allocation8 + $0x2a0] ss:$8 sps:$4 sm:$0xff]  }
 0x11e   :  { %1383 = vmatpush1.bf16.msra.mxu0 %v1789_v52  ;;  %v440_v0 = vpop.f32.mrf.mxu0  ;;  %v481_v5 = vpop.f32.mrf.mxu1  ;;  %v1852_v52 = vld [vmem:[#allocation8 + $0x3b0] ss:$8 sps:$4 sm:$0xff]   ;;  %v1863_v61 = vld [vmem:[#allocation8 + $0x294] ss:$8 sps:$4 sm:$0xff]  }
 0x11f   :  { %1424 = vmatpush1.bf16.msra.mxu1 %v1792_v55  ;;  %1384 = vmatprep.subr.bf16.mxu0 %v1797_v56  ;;  %vm489_vm5 = vcmp.gt.f32.partialorder %v439_v60, 0.0  ;;  %v497_v4 = vmul.f32 0.2, %v439_v60  ;;  %vm491_vm6 = vcmp.gt.f32.partialorder %v480_v2, 0.0  ;;  %v499_v7 = vmul.f32 0.2, %v480_v2 }
 0x120   :  { %1425 = vmatprep.subr.bf16.mxu1 %v1800_v58  ;;  %v441_v10 = vpop.f32.mrf.mxu0  ;;  %v482_v12 = vpop.f32.mrf.mxu1  ;;  %v135_v55 = vrot.slane %v2040_v9, %v134_v48  ;;  %v1860_v56 = vld [vmem:[#allocation8 + $0x3a4] ss:$8 sps:$4 sm:$0xff]   ;;  %v143_v58 = vrot.slane %v2040_v9, %v142_v50  ;;  %v1861_v0 = vld [vmem:[#allocation8 + $0x290] ss:$8 sps:$4 sm:$0xff]  }
 0x121   :  { %v505_v13 = vsel %vm489_vm5, %v439_v60, %v497_v4  ;;  %v507_v16 = vsel %vm491_vm6, %v480_v2, %v499_v7  ;;  %v1858_v60 = vld [vmem:[#allocation8 + $0x3a0] ss:$8 sps:$4 sm:$0xff]   ;;  %v1864_v2 = vld [vmem:[#allocation8 + $0x390] ss:$8 sps:$4 sm:$0xff]   ;;  %v1872_v9 = vld [vmem:[#allocation8 + $0x384] ss:$8 sps:$4 sm:$0xff]  }
 0x122   :  { %1385 = vmatpush1.bf16.msra.mxu0 %v1795_v62  ;;  %v513_v15 = vpack.c.bf16 %v505_v13, %v505_v13  ;;  %v515_v19 = vpack.c.bf16 %v507_v16, %v507_v16  ;;  %v437_v1 = vadd.f32 %v2056_v53, %v135_v55  ;;  %v1866_v62 = vld [vmem:[#allocation8 + $0x394] ss:$8 sps:$4 sm:$0xff]   ;;  %v1870_v53 = vld [vmem:[#allocation8 + $0x380] ss:$8 sps:$4 sm:$0xff]   ;;  %v1670_v50 = vld [vmem:[#allocation2] ss:$0 sm:$0xff] }
 0x123   :  { %1426 = vmatpush1.bf16.msra.mxu1 %v1798_v63  ;;  %1386 = vmatprep.subr.bf16.mxu0 %v1803_v3  ;;  %v478_v63 = vadd.f32 %v2059_v57, %v143_v58  ;;  %v1869_v3 = vld [vmem:[#allocation8 + $0x284] ss:$8 sps:$4 sm:$0xff]  }
 0x124   :  { %1427 = vmatprep.subr.bf16.mxu1 %v1806_v6  ;;  %1410 = vmatprep.mubr.bf16.mxu0 %v513_v15  ;;  %v496_v4 = vmul.f32 0.2, %v437_v1  ;;  %vm488_vm7 = vcmp.gt.f32.partialorder %v437_v1, 0.0  ;;  %v1867_v6 = vld [vmem:[#allocation8 + $0x280] ss:$8 sps:$4 sm:$0xff]  }
 0x125   :  { %1451 = vmatprep.mubr.bf16.mxu1 %v515_v19  ;;  %v498_v5 = vmul.f32 0.2, %v478_v63  ;;  %vm490_vm8 = vcmp.gt.f32.partialorder %v478_v63, 0.0 }
 0x126   :  { %1387 = vmatpush1.bf16.msra.mxu0 %v1801_v14  ;;  %v504_v7 = vsel %vm488_vm7, %v437_v1, %v496_v4 }
 0x127   :  { %1428 = vmatpush1.bf16.msra.mxu1 %v1804_v17  ;;  %1388 = vmatprep.subr.bf16.mxu0 %v1809_v18  ;;  %v506_v57 = vsel %vm490_vm8, %v478_v63, %v498_v5  ;;  %v512_v10 = vpack.c.bf16 %v504_v7, %v504_v7 }
 0x128   :  { %1429 = vmatprep.subr.bf16.mxu1 %v1812_v20  ;;  %v514_v12 = vpack.c.bf16 %v506_v57, %v506_v57 }
 0x12a   :  { %1389 = vmatpush1.bf16.msra.mxu0 %v1807_v21  ;;  %v644_v21 = vld [vmem:[%s2084_s4] sm:$0x3] }
 0x12b   :  { %1430 = vmatpush1.bf16.msra.mxu1 %v1810_v22  ;;  %1390 = vmatprep.subr.bf16.mxu0 %v1815_v23  ;;  %v649_v22 = vrot.slane %v644_v21, %v2038_v8  ;;  %v653_v23 = vrot.slane %v644_v21, %v2044_v11 }
 0x12c   :  { %1431 = vmatprep.subr.bf16.mxu1 %v1818_v24 }
 0x12e   :  { %1391 = vmatpush1.bf16.msra.mxu0 %v1813_v25 }
 0x12f   :  { %1432 = vmatpush1.bf16.msra.mxu1 %v1816_v26  ;;  %1392 = vmatprep.subr.bf16.mxu0 %v1821_v27 }
 0x130   :  { %1433 = vmatprep.subr.bf16.mxu1 %v1824_v28 }
 0x132   :  { %1393 = vmatpush1.bf16.msra.mxu0 %v1819_v29 }
 0x133   :  { %1434 = vmatpush1.bf16.msra.mxu1 %v1822_v30  ;;  %1394 = vmatprep.subr.bf16.mxu0 %v1827_v31 }
 0x134   :  { %1435 = vmatprep.subr.bf16.mxu1 %v1830_v32 }
 0x136   :  { %1395 = vmatpush2.bf16.msra.mxu0 %v1825_v33 }
 0x137   :  { %1436 = vmatpush2.bf16.msra.mxu1 %v1828_v34  ;;  %1396 = vmatprep.subr.bf16.mxu0 %v1833_v35  ;;  %v1466_v35 = vld [vmem:[%s2085_s5] sm:$0x3] }
 0x138   :  { %1437 = vmatprep.subr.bf16.mxu1 %v1836_v36 }
 0x13a   :  { %1397 = vmatpush2.bf16.msra.mxu0 %v1831_v37 }
 0x13b   :  { %1438 = vmatpush2.bf16.msra.mxu1 %v1834_v38  ;;  %1398 = vmatprep.subr.bf16.mxu0 %v1839_v39 }
 0x13c   :  { %1439 = vmatprep.subr.bf16.mxu1 %v1842_v40 }
 0x13e   :  { %1399 = vmatpush2.bf16.msra.mxu0 %v1837_v41  ;;  %v1471_v41 = vrot.slane %v1466_v35, %v2038_v8 }
 0x13f   :  { %1440 = vmatpush2.bf16.msra.mxu1 %v1840_v42  ;;  %1400 = vmatprep.subr.bf16.mxu0 %v1845_v43  ;;  %v1475_v42 = vrot.slane %v1466_v35, %v2044_v11 }
 0x140   :  { %1441 = vmatprep.subr.bf16.mxu1 %v1848_v44 }
 0x142   :  { %1401 = vmatpush2.bf16.msra.mxu0 %v1843_v45 }
 0x143   :  { %1442 = vmatpush2.bf16.msra.mxu1 %v1846_v46  ;;  %1402 = vmatprep.subr.bf16.mxu0 %v1851_v47 }
 0x144   :  { %1443 = vmatprep.subr.bf16.mxu1 %v1854_v49 }
 0x146   :  { %1403 = vmatpush2.bf16.msra.mxu0 %v1849_v51 }
 0x147   :  { %1444 = vmatpush2.bf16.msra.mxu1 %v1852_v52  ;;  %1404 = vmatprep.subr.bf16.mxu0 %v1857_v54 }
 0x148   :  { %1445 = vmatprep.subr.bf16.mxu1 %v1860_v56 }
 0x14a   :  { %1405 = vmatpush2.bf16.msra.mxu0 %v1855_v59 }
 0x14b   :  { %1446 = vmatpush2.bf16.msra.mxu1 %v1858_v60  ;;  %1406 = vmatprep.subr.bf16.mxu0 %v1863_v61 }
 0x14c   :  { %1447 = vmatprep.subr.bf16.mxu1 %v1866_v62 }
 0x14e   :  { %1407 = vmatpush2.bf16.msra.mxu0 %v1861_v0 }
 0x14f   :  { %1448 = vmatpush2.bf16.msra.mxu1 %v1864_v2  ;;  %1408 = vmatprep.subr.bf16.mxu0 %v1869_v3 }
 0x150   :  { %1449 = vmatprep.subr.bf16.mxu1 %v1872_v9 }
 0x152   :  { %1409 = vmatpush2.bf16.msra.mxu0 %v1867_v6 }
 0x153   :  { %1450 = vmatpush2.bf16.msra.mxu1 %v1870_v53 }
 0x155   :  { %1411 = vmatmul.mubr.bf16.vlgmr.msra.gmra.mxu0 %v512_v10 }
 0x156   :  { %1452 = vmatmul.mubr.bf16.vlgmr.msra.gmra.mxu1 %v514_v12 }
 0x1d5   :  { %v1330_v13 = vpop.f32.mrf.mxu0 }
 0x1d6   :  { %v1371_v14 = vpop.f32.mrf.mxu1  ;;  %v1331_v24 = vadd.f32 %v1330_v13, %v649_v22 }
 0x1d7   :  { %v1332_v15 = vpop.f32.mrf.mxu0 }
 0x1d8   :  { %v1373_v16 = vpop.f32.mrf.mxu1  ;;  %v1333_v25 = vadd.f32 %v1332_v15, %v653_v23  ;;  %v1372_v26 = vadd.f32 %v1371_v14, %v1331_v24 }
 0x1d9   :  { %v1334_v17 = vpop.f32.mrf.mxu0 }
 0x1da   :  { %v1375_v18 = vpop.f32.mrf.mxu1  ;;  %v1374_v28 = vadd.f32 %v1373_v16, %v1333_v25 }
 0x1db   :  { %v1335_v19 = vpop.f32.mrf.mxu0 }
 0x1dc   :  { %v1376_v20 = vpop.f32.mrf.mxu1 }
 0x215   :  { %v1412_v27 = vpop.f32.mrf.mxu0 }
 0x216   :  { %v1413_v29 = vadd.f32 %v1412_v27, %v1372_v26  ;;  %v1453_v30 = vpop.f32.mrf.mxu1 }
 0x217   :  { %v1414_v31 = vpop.f32.mrf.mxu0 }
 0x218   :  { %v1454_v32 = vadd.f32 %v1453_v30, %v1413_v29  ;;  %v1415_v33 = vadd.f32 %v1414_v31, %v1374_v28  ;;  %v1455_v34 = vpop.f32.mrf.mxu1 }
 0x219   :  { %v1416_v36 = vpop.f32.mrf.mxu0 }
 0x21a   :  { %vm1460_vm9 = vcmp.gt.f32.partialorder %v1454_v32, 0.0  ;;  %v1462_v37 = vmul.f32 0.2, %v1454_v32  ;;  %v1456_v38 = vadd.f32 %v1455_v34, %v1415_v33  ;;  %v1457_v39 = vpop.f32.mrf.mxu1 }
 0x21b   :  { %v1417_v40 = vpop.f32.mrf.mxu0 }
 0x21c   :  { %vm1461_vm10 = vcmp.gt.f32.partialorder %v1456_v38, 0.0  ;;  %v1463_v43 = vmul.f32 0.2, %v1456_v38  ;;  %v1458_v44 = vpop.f32.mrf.mxu1  ;;  %v1464_v45 = vsel %vm1460_vm9, %v1454_v32, %v1462_v37 }
 0x21d   :  { %v1478_v47 = vmul.f32 %v1471_v41, %v1464_v45 }
 0x21e   :  { %v1465_v46 = vsel %vm1461_vm10, %v1456_v38, %v1463_v43 }
 0x21f   :  { %v1479_v48 = vmul.f32 %v1475_v42, %v1465_v46 }
 0x221   :  { %v1480_v49 = vadd.f32 %v1479_v48, %v1478_v47 }
 0x223   :  { %1481 = vadd.xlane.f32.xlu0 %v1480_v49 }
 0x2ac   :  { %v1482_v51 = vpop.xlane.xlu0 %1481 }
 0x2ad   :  { %v1490_v52 = vadd.f32 %v1670_v50, %v1482_v51 }
 0x2af   :  { %v1671_v54 = vmul.f32 -1.442695, %v1490_v52 }
 0x2b1   :  { %1873 = vpow2.f32 %v1671_v54 }
 0x2be   :  { %v1874_v55 = vpop.eup %1873 }
 0x2bf   :  { %v1494_v56 = vadd.f32 1.0, %v1874_v55 }
 0x2c1   :  { %1875 = vrcp.f32 %v1494_v56 }
 0x2ce   :  { %v1876_v8 = vpop.eup %1875 }
 0x2cf   :  { %1498 = vst.msk [vmem:[%s2087_s7] sm:$0xff] %vm1497_vm11, %v1876_v8 }
 0x2d0   :  { %1503 = vsyncpa [#allocation4], 1 }
 0x2d1   :  { %1504 = vsyncpa [#allocation6], 1 }
 0x2d2   :  { %1505 = vsyncpa [#allocation9], 1 }

</bundles_post_ra>
